<compile_context>
chip_gen: v7x
topology: tpu7x:2x2x1
jax: 0.10.0
libtpu: 0.0.40
codegen_flags: <defaults>
</compile_context>

<pallas_src>
import functools

import jax
import jax.numpy as jnp
from jax.experimental import pallas as pl
from jax.experimental.pallas import tpu as pltpu


def _round_up(x, m):
    return (x + m - 1) // m * m


def _vmem_limit_bytes():
    """Scoped-VMEM cap ≈ half of physical (v5e/v6e: 64 MiB, v7x: 32 MiB)."""
    try:
        cap = pltpu.get_tpu_info().vmem_capacity_bytes
    except Exception:  # conservative fallback if the query is unavailable
        cap = 64 * 1024 * 1024
    return int(min(96 * 1024 * 1024, max(32 * 1024 * 1024, cap // 2)))


def _row_tile(rows, target=512):
    """Largest multiple-of-8 row tile dividing `rows` (fallback: full rows)."""
    if rows <= target:
        return rows
    t = (target // 8) * 8
    while t >= 8:
        if rows % t == 0:
            return t
        t -= 8
    # Fallback: one full-height block.  vmem_limit_bytes turns a pathological
    # case into a compile-time error rather than a silent VMEM OOM.
    return rows


# --------------------------- Pass 1: BN statistics ---------------------------

def _bn_stats_kernel(x_ref, sum_ref, sq_ref):
    """Accumulate per-lane sum / sum-of-squares over row tiles.

    x_ref   : (TR, WpC_pad) tile of the (N*Hp, WpC_pad) padded-activation view.
    sum_ref : (1, WpC_pad)  resident accumulator (sum).
    sq_ref  : (1, WpC_pad)  resident accumulator (sum of squares).
    Zero padding rows / columns contribute nothing to either accumulator.
    """
    @pl.when(pl.program_id(0) == 0)
    def _init():
        sum_ref[...] = jnp.zeros_like(sum_ref)
        sq_ref[...] = jnp.zeros_like(sq_ref)

    x = x_ref[...]
    sum_ref[...] += jnp.sum(x, axis=0, keepdims=True)
    sq_ref[...] += jnp.sum(x * x, axis=0, keepdims=True)


# ----------------- Pass 2: fused BN-apply + ReLU + Conv2d --------------------

def _convblock_kernel(x_ref, scale_ref, shift_ref, w_ref, b_ref, o_ref, *,
                      ksize, stride):
    """Fused BN-apply + ReLU + Conv2d (+ identity dropout) for Bn images.

    x_ref     : (Bn, Hp, WpC_pad)     pre-padded input (rows + lanes)
    scale_ref : (Hp, WpC_pad)         gamma*rsqrt(var+eps); 0 in pad rows/cols
    shift_ref : (Hp, WpC_pad)         beta - mean*scale;    0 in pad rows/cols
    w_ref     : (K*WpC_pad, Wo*Cout)  bf16 block-Toeplitz weights
    b_ref     : (1, Wo*Cout)          bias tiled along Wo
    o_ref     : (Bn, Ho, Wo*Cout)
    """
    bn, _, wpc = x_ref.shape
    _, ho, woc = o_ref.shape

    # BN apply + ReLU, lane-dense.  Every padded position (top/bottom rows,
    # left/right width pad, 128-lane tail) has scale = shift = 0, so it comes
    # out as relu(0) == 0 — exactly the conv's zero padding, with no concat.
    act = jnp.maximum(x_ref[...] * scale_ref[...] + shift_ref[...], 0.0)

    # Single MXU matmul: K row-shifted views stacked along the lane axis at
    # 128-aligned offsets (pure vreg stacking), batch folded into M.
    span = (ho - 1) * stride + 1
    taps = [act[:, i:i + span:stride, :] for i in range(ksize)]
    lhs = jnp.concatenate(taps, axis=-1)                    # (Bn, Ho, K*WpC)
    lhs = lhs.reshape(bn * ho, ksize * wpc).astype(jnp.bfloat16)

    out = jnp.dot(lhs, w_ref[...], preferred_element_type=jnp.float32)
    # Dropout2d: identity (eval mode).  Bias folded into the single epilogue.
    o_ref[...] = (out.reshape(bn, ho, woc) + b_ref[...]).astype(o_ref.dtype)


# ------------------------------ Host wrappers --------------------------------

def build_convblock_weights(w_oihw, bias, *, kernel_size, stride, padding,
                            in_width):
    """One-time (per weight tensor) block-Toeplitz expansion; cache the result.

    Returns (w_mat, bias_row):
      w_mat    : (K*WpC_pad, Wo*Cout) bf16; rows for the 128-lane zero padding
                 are zero so they contribute nothing to the matmul.
      bias_row : (1, Wo*Cout) f32.
    # TODO(synk): at large feature maps the Toeplitz rhs grows as Wp*Wo and can
    # exceed v7x's 64 MiB VMEM; add a Wo-tiling grid axis (or fall back to k
    # per-tap matmuls with an f32 VMEM accumulator) before scaling up.
    """
    k, s, p = kernel_size, stride, padding
    c_out, c_in = int(w_oihw.shape[0]), int(w_oihw.shape[1])
    w_in = int(in_width)
    wp = w_in + 2 * p
    wo = (wp - k) // s + 1
    wpc = wp * c_in
    wpc_pad = _round_up(wpc, 128)
    woc = wo * c_out

    w_hwio = jnp.transpose(w_oihw, (2, 3, 1, 0)).astype(jnp.float32)  # (k,k,Ci,Co)
    sel = (jnp.arange(wp)[None, None, :] ==
           (jnp.arange(wo)[:, None, None] * s +
            jnp.arange(k)[None, :, None])).astype(jnp.float32)        # (Wo,k,Wp)
    w_mat = jnp.einsum("ijcd,ojw->iwcod", w_hwio, sel)        # (k,Wp,Ci,Wo,Co)
    w_mat = w_mat.reshape(k, wpc, woc)
    w_mat = jnp.pad(w_mat, ((0, 0), (0, wpc_pad - wpc), (0, 0)))
    w_mat = w_mat.reshape(k * wpc_pad, woc).astype(jnp.bfloat16)

    bias_row = jnp.tile(bias.reshape(1, c_out).astype(jnp.float32), (1, wo))
    return w_mat, bias_row


@functools.partial(
    jax.jit,
    static_argnames=("kernel_size", "stride", "padding", "out_channels", "eps"))
def conv_blocks_forward(x_nchw, gamma, beta, w_mat, bias_row, *,
                        kernel_size, stride, padding, out_channels, eps=1e-5):
    """Pallas implementation of ConvBlocks.forward. Input/output are NCHW."""
    k, s, p = kernel_size, stride, padding
    x = jnp.transpose(x_nchw, (0, 2, 3, 1)).astype(jnp.float32)   # NHWC
    n, h, w, c_in = x.shape
    c_out = out_channels
    hp, wp = h + 2 * p, w + 2 * p
    ho = (hp - k) // s + 1
    wo = (wp - k) // s + 1
    wc = w * c_in
    wpc = wp * c_in
    wpc_pad = _round_up(wpc, 128)
    lane_pad = wpc_pad - wpc
    woc = wo * c_out
    assert w_mat.shape == (k * wpc_pad, woc), (w_mat.shape, (k * wpc_pad, woc))

    vmem_limit = _vmem_limit_bytes()

    # Single padded activation materialization, shared by BOTH passes:
    # rows padded by p (conv vertical pad), lanes padded by p*Cin on each side
    # (conv horizontal pad) plus lane_pad zeros up to a multiple of 128.
    x_pad = jnp.pad(x.reshape(n, h, wc),
                    ((0, 0), (p, p), (p * c_in, p * c_in + lane_pad)))

    # ---- Pass 1: BatchNorm batch statistics (lane-dense Pallas reduction) ----
    rows = n * hp
    tr = _row_tile(rows)
    sum_pad, sq_pad = pl.pallas_call(
        _bn_stats_kernel,
        out_shape=(jax.ShapeDtypeStruct((1, wpc_pad), jnp.float32),
                   jax.ShapeDtypeStruct((1, wpc_pad), jnp.float32)),
        grid=(rows // tr,),
        in_specs=[pl.BlockSpec((tr, wpc_pad), lambda i: (i, 0))],
        out_specs=(pl.BlockSpec((1, wpc_pad), lambda i: (0, 0)),
                   pl.BlockSpec((1, wpc_pad), lambda i: (0, 0))),
        compiler_params=pltpu.CompilerParams(
            dimension_semantics=("arbitrary",),
            vmem_limit_bytes=vmem_limit),
    )(x_pad.reshape(rows, wpc_pad))

    # Per-channel reduction of the lane-wise sums (pad lanes/rows are zero).
    cnt = float(n * h * w)
    sums = sum_pad[0, :wpc].reshape(wp, c_in).sum(axis=0)
    sqs = sq_pad[0, :wpc].reshape(wp, c_in).sum(axis=0)
    mean = sums / cnt
    # NOTE: E[x^2] - E[x]^2 in f32 can cancel for data with |mean| >> std;
    # clamp at 0 to stay finite (Welford/shifted accumulation would be the
    # robust fix if such data is expected).
    var = jnp.maximum(sqs / cnt - mean * mean, 0.0)                 # biased var
    scale = gamma.astype(jnp.float32) * jax.lax.rsqrt(var + eps)    # (Cin,)
    shift = beta.astype(jnp.float32) - mean * scale                 # (Cin,)

    # 2-D scale/shift with zeros in every padded row / column, so the kernel's
    # relu(x*scale + shift) reproduces the conv's zero padding with no concat.
    def _pad2d(vec):
        row = jnp.pad(jnp.tile(vec, w), (p * c_in, p * c_in + lane_pad))
        return jnp.pad(jnp.tile(row[None, :], (h, 1)), ((p, p), (0, 0)))

    scale_2d = _pad2d(scale)                                        # (Hp, WpC_pad)
    shift_2d = _pad2d(shift)

    # ---- Pass 2: fused normalize + ReLU + conv, batch folded into M ----
    # Bn images per grid step: fill the MXU M dim (target Bn*Ho <= 256); keep
    # an even step count for v7x's two TensorCores only when that does not
    # drop the matmul below ~128 rows.
    bn = 1
    for cand in range(1, n + 1):
        if n % cand == 0 and cand * ho <= 256:
            bn = cand
    if (n // bn) % 2 == 1 and bn % 2 == 0 and (bn // 2) * ho >= 128:
        bn //= 2

    kern = functools.partial(_convblock_kernel, ksize=k, stride=s)
    y = pl.pallas_call(
        kern,
        out_shape=jax.ShapeDtypeStruct((n, ho, woc), jnp.float32),
        grid=(n // bn,),
        in_specs=[
            pl.BlockSpec((bn, hp, wpc_pad), lambda i: (i, 0, 0)),
            pl.BlockSpec((hp, wpc_pad), lambda i: (0, 0)),
            pl.BlockSpec((hp, wpc_pad), lambda i: (0, 0)),
            pl.BlockSpec((k * wpc_pad, woc), lambda i: (0, 0)),
            pl.BlockSpec((1, woc), lambda i: (0, 0)),
        ],
        out_specs=pl.BlockSpec((bn, ho, woc), lambda i: (i, 0, 0)),
        compiler_params=pltpu.CompilerParams(
            dimension_semantics=("parallel",),
            vmem_limit_bytes=vmem_limit),
    )(x_pad, scale_2d, shift_2d, w_mat, bias_row)

    # (N, Ho, Wo*Cout) -> NCHW
    return jnp.transpose(y.reshape(n, ho, wo, c_out), (0, 3, 1, 2))


def _reference(x_nchw, gamma, beta, w_oihw, bias, kernel_size, stride, padding,
               eps=1e-5):
    """Pure-JAX reference of the same forward pass (NCHW)."""
    x = x_nchw.astype(jnp.float32)
    mean = jnp.mean(x, axis=(0, 2, 3), keepdims=True)
    var = jnp.mean((x - mean) ** 2, axis=(0, 2, 3), keepdims=True)
    xh = (x - mean) * jax.lax.rsqrt(var + eps)
    a = jnp.maximum(xh * gamma.reshape(1, -1, 1, 1) + beta.reshape(1, -1, 1, 1),
                    0.0)
    y = jax.lax.conv_general_dilated(
        a, w_oihw.astype(jnp.float32), (stride, stride),
        [(padding, padding), (padding, padding)],
        dimension_numbers=("NCHW", "OIHW", "NCHW"))
    return y + bias.reshape(1, -1, 1, 1)


if __name__ == "__main__":
    # ConvBlocks(in_ch=4, out_ch=8, kernel_size=3, stride=1, padding=1, drop_rate=0.3)
    N, Cin, H, W = 2, 4, 16, 16
    Cout, ksize, stride, pad = 8, 3, 1, 1

    key = jax.random.PRNGKey(0)
    kx, kw, kb, kg, kbt = jax.random.split(key, 5)
    x_nchw = jax.random.normal(kx, (N, Cin, H, W), jnp.float32)
    w_oihw = jax.random.normal(kw, (Cout, Cin, ksize, ksize), jnp.float32) * 0.1
    bias = jax.random.normal(kb, (Cout,), jnp.float32) * 0.1
    gamma = 1.0 + jax.random.normal(kg, (Cin,), jnp.float32) * 0.1
    beta = jax.random.normal(kbt, (Cin,), jnp.float32) * 0.1

    # Hoisted one-time weight expansion (cache per weight tensor in real use).
    w_mat, bias_row = build_convblock_weights(
        w_oihw, bias, kernel_size=ksize, stride=stride, padding=pad, in_width=W)

    y = conv_blocks_forward(x_nchw, gamma, beta, w_mat, bias_row,
                            kernel_size=ksize, stride=stride, padding=pad,
                            out_channels=Cout)
    y = jax.block_until_ready(y)

    y_ref = _reference(x_nchw, gamma, beta, w_oihw, bias, ksize, stride, pad)
    assert y.shape == (N, Cout, H, W), y.shape
    max_err = float(jnp.max(jnp.abs(y - y_ref)))
    # bf16 MXU inputs with f32 accumulation -> loosened tolerance.
    assert jnp.allclose(y, y_ref, atol=2e-2, rtol=2e-2), max_err

    print("KERNEL_OK")
</pallas_src>

<mosaic_0001>
module attributes {stable_mosaic.version = 11 : i64} {
  func.func @_bn_stats_kernel(%arg0: i32, %arg1: memref<36x128xf32, #tpu.memory_space<vmem>>, %arg2: memref<1x128xf32, #tpu.memory_space<vmem>>, %arg3: memref<1x128xf32, #tpu.memory_space<vmem>>) attributes {dimension_semantics = [#tpu.dimension_semantics<arbitrary>], iteration_bounds = array<i64: 1>, scalar_prefetch = 0 : i64, scratch_operands = 0 : i64, tpu.core_type = #tpu.core_type<tc>, window_params = [{transform_indices = @transform_0, window_bounds = array<i64: 36, 128>}, {pipeline_mode = #tpu.pipeline_mode<synchronous>, transform_indices = @transform_1, window_bounds = array<i64: 1, 128>}, {pipeline_mode = #tpu.pipeline_mode<synchronous>, transform_indices = @transform_2, window_bounds = array<i64: 1, 128>}]} {
    %c0_i32 = arith.constant 0 : i32
    %0 = arith.cmpi eq, %arg0, %c0_i32 : i32
    %1 = arith.extui %0 : i1 to i32
    %c0_i32_0 = arith.constant 0 : i32
    %2 = arith.cmpi ne, %1, %c0_i32_0 : i32
    scf.if %2 {
      %cst_11 = arith.constant 0.000000e+00 : f32
      %15 = vector.broadcast %cst_11 : f32 to vector<1x128xf32>
      %c0_12 = arith.constant 0 : index
      %c0_13 = arith.constant 0 : index
      %16 = vector.load %arg2[%c0_12, %c0_13] : memref<1x128xf32, #tpu.memory_space<vmem>>, vector<1x128xf32>
      tpu.vector_store %arg2[%c0_12, %c0_13], %15 {strides = array<i32>} : memref<1x128xf32, #tpu.memory_space<vmem>>, vector<1x128xf32>,
      %cst_14 = arith.constant 0.000000e+00 : f32
      %17 = vector.broadcast %cst_14 : f32 to vector<1x128xf32>
      %c0_15 = arith.constant 0 : index
      %c0_16 = arith.constant 0 : index
      %18 = vector.load %arg3[%c0_15, %c0_16] : memref<1x128xf32, #tpu.memory_space<vmem>>, vector<1x128xf32>
      tpu.vector_store %arg3[%c0_15, %c0_16], %17 {strides = array<i32>} : memref<1x128xf32, #tpu.memory_space<vmem>>, vector<1x128xf32>,
    } else {
    }
    %c0 = arith.constant 0 : index
    %c0_1 = arith.constant 0 : index
    %3 = vector.load %arg1[%c0, %c0_1] : memref<36x128xf32, #tpu.memory_space<vmem>>, vector<36x128xf32>
    %c0_2 = arith.constant 0 : index
    %c0_3 = arith.constant 0 : index
    %4 = vector.load %arg2[%c0_2, %c0_3] : memref<1x128xf32, #tpu.memory_space<vmem>>, vector<1x128xf32>
    %cst = arith.constant dense<0.000000e+00> : vector<128xf32>
    %5 = vector.multi_reduction <add>, %3, %cst [0] : vector<36x128xf32> to vector<128xf32>
    %6 = vector.shape_cast %5 : vector<128xf32> to vector<1x128xf32>
    %7 = arith.addf %4, %6 : vector<1x128xf32>
    %c0_4 = arith.constant 0 : index
    %c0_5 = arith.constant 0 : index
    %8 = vector.load %arg2[%c0_4, %c0_5] : memref<1x128xf32, #tpu.memory_space<vmem>>, vector<1x128xf32>
    tpu.vector_store %arg2[%c0_4, %c0_5], %7 {strides = array<i32>} : memref<1x128xf32, #tpu.memory_space<vmem>>, vector<1x128xf32>,
    %c0_6 = arith.constant 0 : index
    %c0_7 = arith.constant 0 : index
    %9 = vector.load %arg3[%c0_6, %c0_7] : memref<1x128xf32, #tpu.memory_space<vmem>>, vector<1x128xf32>
    %10 = arith.mulf %3, %3 : vector<36x128xf32>
    %cst_8 = arith.constant dense<0.000000e+00> : vector<128xf32>
    %11 = vector.multi_reduction <add>, %10, %cst_8 [0] : vector<36x128xf32> to vector<128xf32>
    %12 = vector.shape_cast %11 : vector<128xf32> to vector<1x128xf32>
    %13 = arith.addf %9, %12 : vector<1x128xf32>
    %c0_9 = arith.constant 0 : index
    %c0_10 = arith.constant 0 : index
    %14 = vector.load %arg3[%c0_9, %c0_10] : memref<1x128xf32, #tpu.memory_space<vmem>>, vector<1x128xf32>
    tpu.vector_store %arg3[%c0_9, %c0_10], %13 {strides = array<i32>} : memref<1x128xf32, #tpu.memory_space<vmem>>, vector<1x128xf32>,
    return
  }
  func.func @transform_0(%arg0: i32) -> (i32, i32) {
    %c0_i32 = arith.constant 0 : i32
    %c0_i32_0 = arith.constant 0 : i32
    return %arg0, %c0_i32 : i32, i32
  }
  func.func @transform_1(%arg0: i32) -> (i32, i32) {
    %c0_i32 = arith.constant 0 : i32
    %c0_i32_0 = arith.constant 0 : i32
    %c0_i32_1 = arith.constant 0 : i32
    return %c0_i32, %c0_i32_0 : i32, i32
  }
  func.func @transform_2(%arg0: i32) -> (i32, i32) {
    %c0_i32 = arith.constant 0 : i32
    %c0_i32_0 = arith.constant 0 : i32
    %c0_i32_1 = arith.constant 0 : i32
    return %c0_i32, %c0_i32_0 : i32, i32
  }
}

module attributes {stable_mosaic.version = 11 : i64} {
  func.func @_convblock_kernel(%arg0: i32, %arg1: memref<2x18x128xf32, #tpu.memory_space<vmem>>, %arg2: memref<18x128xf32, #tpu.memory_space<vmem>>, %arg3: memref<18x128xf32, #tpu.memory_space<vmem>>, %arg4: memref<384x128xbf16, #tpu.memory_space<vmem>>, %arg5: memref<1x128xf32, #tpu.memory_space<vmem>>, %arg6: memref<2x16x128xf32, #tpu.memory_space<vmem>>) attributes {dimension_semantics = [#tpu.dimension_semantics<parallel>], iteration_bounds = array<i64: 1>, scalar_prefetch = 0 : i64, scratch_operands = 0 : i64, tpu.core_type = #tpu.core_type<tc>, window_params = [{transform_indices = @transform_0, window_bounds = array<i64: 2, 18, 128>}, {pipeline_mode = #tpu.pipeline_mode<synchronous>, transform_indices = @transform_1, window_bounds = array<i64: 18, 128>}, {pipeline_mode = #tpu.pipeline_mode<synchronous>, transform_indices = @transform_2, window_bounds = array<i64: 18, 128>}, {pipeline_mode = #tpu.pipeline_mode<synchronous>, transform_indices = @transform_3, window_bounds = array<i64: 384, 128>}, {pipeline_mode = #tpu.pipeline_mode<synchronous>, transform_indices = @transform_4, window_bounds = array<i64: 1, 128>}, {transform_indices = @transform_5, window_bounds = array<i64: 2, 16, 128>}]} {
    %c0 = arith.constant 0 : index
    %c0_0 = arith.constant 0 : index
    %c0_1 = arith.constant 0 : index
    %0 = vector.load %arg1[%c0, %c0_0, %c0_1] : memref<2x18x128xf32, #tpu.memory_space<vmem>>, vector<2x18x128xf32>
    %c0_2 = arith.constant 0 : index
    %c0_3 = arith.constant 0 : index
    %1 = vector.load %arg2[%c0_2, %c0_3] : memref<18x128xf32, #tpu.memory_space<vmem>>, vector<18x128xf32>
    %2 = vector.shape_cast %1 : vector<18x128xf32> to vector<1x18x128xf32>
    %3 = vector.broadcast %2 : vector<1x18x128xf32> to vector<2x18x128xf32>
    %4 = arith.mulf %0, %3 : vector<2x18x128xf32>
    %c0_4 = arith.constant 0 : index
    %c0_5 = arith.constant 0 : index
    %5 = vector.load %arg3[%c0_4, %c0_5] : memref<18x128xf32, #tpu.memory_space<vmem>>, vector<18x128xf32>
    %6 = vector.shape_cast %5 : vector<18x128xf32> to vector<1x18x128xf32>
    %7 = vector.broadcast %6 : vector<1x18x128xf32> to vector<2x18x128xf32>
    %8 = arith.addf %4, %7 : vector<2x18x128xf32>
    %cst = arith.constant 0.000000e+00 : f32
    %9 = vector.broadcast %cst : f32 to vector<2x18x128xf32>
    %10 = arith.maximumf %8, %9 : vector<2x18x128xf32>
    %11 = vector.extract_strided_slice %10 {offsets = [0, 0, 0], sizes = [2, 16, 128], strides = [1, 1, 1]} : vector<2x18x128xf32> to vector<2x16x128xf32>
    %12 = vector.extract_strided_slice %10 {offsets = [0, 1, 0], sizes = [2, 16, 128], strides = [1, 1, 1]} : vector<2x18x128xf32> to vector<2x16x128xf32>
    %13 = vector.extract_strided_slice %10 {offsets = [0, 2, 0], sizes = [2, 16, 128], strides = [1, 1, 1]} : vector<2x18x128xf32> to vector<2x16x128xf32>
    %14 = tpu.concatenate %11, %12, %13 in 2 : vector<2x16x128xf32>, vector<2x16x128xf32>, vector<2x16x128xf32> -> vector<2x16x384xf32>
    %15 = vector.shape_cast %14 : vector<2x16x384xf32> to vector<32x384xf32>
    %16 = arith.truncf %15 : vector<32x384xf32> to vector<32x384xbf16>
    %c0_6 = arith.constant 0 : index
    %c0_7 = arith.constant 0 : index
    %17 = vector.load %arg4[%c0_6, %c0_7] : memref<384x128xbf16, #tpu.memory_space<vmem>>, vector<384x128xbf16>
    %cst_8 = arith.constant dense<0.000000e+00> : vector<32x128xf32>
    %18 = tpu.matmul %16, %17, %cst_8 {dimension_numbers = #tpu.dot_dimension_numbers<[1], [0], [0], [1], [0, 0, 1, 1], [], []>} : vector<32x384xbf16>, vector<384x128xbf16>, vector<32x128xf32> -> vector<32x128xf32>
    %19 = vector.shape_cast %18 : vector<32x128xf32> to vector<2x16x128xf32>
    %c0_9 = arith.constant 0 : index
    %c0_10 = arith.constant 0 : index
    %20 = vector.load %arg5[%c0_9, %c0_10] : memref<1x128xf32, #tpu.memory_space<vmem>>, vector<1x128xf32>
    %21 = vector.shape_cast %20 : vector<1x128xf32> to vector<1x1x128xf32>
    %22 = vector.broadcast %21 : vector<1x1x128xf32> to vector<2x16x128xf32>
    %23 = arith.addf %19, %22 : vector<2x16x128xf32>
    %c0_11 = arith.constant 0 : index
    %c0_12 = arith.constant 0 : index
    %c0_13 = arith.constant 0 : index
    %24 = vector.load %arg6[%c0_11, %c0_12, %c0_13] : memref<2x16x128xf32, #tpu.memory_space<vmem>>, vector<2x16x128xf32>
    tpu.vector_store %arg6[%c0_11, %c0_12, %c0_13], %23 {strides = array<i32>} : memref<2x16x128xf32, #tpu.memory_space<vmem>>, vector<2x16x128xf32>,
    return
  }
  func.func @transform_0(%arg0: i32) -> (i32, i32, i32) {
    %c0_i32 = arith.constant 0 : i32
    %c0_i32_0 = arith.constant 0 : i32
    %c0_i32_1 = arith.constant 0 : i32
    return %arg0, %c0_i32, %c0_i32_0 : i32, i32, i32
  }
  func.func @transform_1(%arg0: i32) -> (i32, i32) {
    %c0_i32 = arith.constant 0 : i32
    %c0_i32_0 = arith.constant 0 : i32
    %c0_i32_1 = arith.constant 0 : i32
    return %c0_i32, %c0_i32_0 : i32, i32
  }
  func.func @transform_2(%arg0: i32) -> (i32, i32) {
    %c0_i32 = arith.constant 0 : i32
    %c0_i32_0 = arith.constant 0 : i32
    %c0_i32_1 = arith.constant 0 : i32
    return %c0_i32, %c0_i32_0 : i32, i32
  }
  func.func @transform_3(%arg0: i32) -> (i32, i32) {
    %c0_i32 = arith.constant 0 : i32
    %c0_i32_0 = arith.constant 0 : i32
    %c0_i32_1 = arith.constant 0 : i32
    return %c0_i32, %c0_i32_0 : i32, i32
  }
  func.func @transform_4(%arg0: i32) -> (i32, i32) {
    %c0_i32 = arith.constant 0 : i32
    %c0_i32_0 = arith.constant 0 : i32
    %c0_i32_1 = arith.constant 0 : i32
    return %c0_i32, %c0_i32_0 : i32, i32
  }
  func.func @transform_5(%arg0: i32) -> (i32, i32, i32) {
    %c0_i32 = arith.constant 0 : i32
    %c0_i32_0 = arith.constant 0 : i32
    %c0_i32_1 = arith.constant 0 : i32
    return %arg0, %c0_i32, %c0_i32_0 : i32, i32, i32
  }
}

</mosaic_0001>

<bundles_post_ra>
// kernel: squeeze.3
= control target key start
LH: loop header
LB: loop body
LE: loop exit
PB: predicated region body
PF: predicated region fallthrough
CT: control target
= control target key end

     0   :  { %s146_s8 = smov 116   ;;  %s147_s9 = smov 120   ;;  %vm7_vm0 = vcmask 31744   ;;  %s247_s0 = inlined_call_operand.vmem [shape: f32[72], index: 0, kind: input, shape index: {}]   ;;  %s248_s1 = inlined_call_operand.vmem [shape: f32[18,4], index: 1, kind: output, shape index: {}]  }
   0x1   :  { %v4_v0 = vld [vmem:[%s247_s0] sm:$0x1]  ;;  %s145_s0 = smov 124   ;;  %s148_s10 = smov 112  }
   0x2   :  { %5 = vst [vmem:[#allocation0] sm:$0x1] %v4_v0  ;;  %s149_s11 = smov 108   ;;  %s150_s12 = smov 104  }
   0x3   :  { %s151_s13 = smov 100   ;;  %s152_s14 = smov 96  }
   0x4   :  { %s153_s15 = smov 92   ;;  %s154_s16 = smov 88  }
   0x5   :  { %s155_s19 = smov 84   ;;  %s156_s20 = smov 80  }
   0x6   :  { %s157_s21 = smov 76   ;;  %s158_s22 = smov 72  }
   0x7   :  { %s159_s23 = smov 68   ;;  %s160_s24 = smov 64  }
   0x8   :  { %s161_s25 = smov 60  }
   0x9   :  { %v9_v1 = vld [vmem:[#allocation0] sm:$0x1]  }
   0xa   :  { %v21_v2 = vld [vmem:[#allocation0] sm:$0x1]   ;;  %10 = vrot.lane.b32.xlu0 %v9_v1, %s145_s0 }
   0xb   :  { %22 = vrot.lane.b32.xlu1 %v21_v2, %s146_s8  ;;  %v15_v3 = vld [vmem:[#allocation0] sm:$0x1]  }
   0xc   :  { %v27_v4 = vld [vmem:[#allocation0] sm:$0x1]  }
   0xd   :  { %v33_v5 = vld [vmem:[#allocation0] sm:$0x1]  }
   0xe   :  { %16 = vrot.lane.b32.xlu0 %v15_v3, %s147_s9  ;;  %v39_v6 = vld [vmem:[#allocation0] sm:$0x1]  }
   0xf   :  { %28 = vrot.lane.b32.xlu1 %v27_v4, %s148_s10  ;;  %v45_v7 = vld [vmem:[#allocation0] sm:$0x1]  }
  0x10   :  { %v51_v8 = vld [vmem:[#allocation0] sm:$0x1]  }
  0x11   :  { %v57_v9 = vld [vmem:[#allocation0] sm:$0x1]  }
  0x12   :  { %34 = vrot.lane.b32.xlu0 %v33_v5, %s149_s11  ;;  %v63_v10 = vld [vmem:[#allocation0] sm:$0x1]  }
  0x13   :  { %40 = vrot.lane.b32.xlu1 %v39_v6, %s150_s12  ;;  %v69_v11 = vld [vmem:[#allocation0] sm:$0x1]  }
  0x14   :  { %v75_v12 = vld [vmem:[#allocation0] sm:$0x1]  }
  0x15   :  { %v6_v13 = vld [vmem:[#allocation0] sm:$0x1]  }
  0x16   :  { %46 = vrot.lane.b32.xlu0 %v45_v7, %s151_s13  ;;  %8 = vst.msk [vmem:[%s248_s1] sm:$0x1] %vm7_vm0, %v6_v13   ;;  %v81_v14 = vld [vmem:[#allocation0] sm:$0x1]  }
  0x17   :  { %52 = vrot.lane.b32.xlu1 %v51_v8, %s152_s14  ;;  %v87_v15 = vld [vmem:[#allocation0] sm:$0x1]  }
  0x18   :  { %v93_v16 = vld [vmem:[#allocation0] sm:$0x1]  }
  0x19   :  { %v99_v17 = vld [vmem:[#allocation0] sm:$0x1]  }
  0x1a   :  { %58 = vrot.lane.b32.xlu0 %v57_v9, %s153_s15  ;;  %v105_v18 = vld [vmem:[#allocation0] sm:$0x1]  }
  0x1b   :  { %64 = vrot.lane.b32.xlu1 %v63_v10, %s154_s16 }
  0x1e   :  { %70 = vrot.lane.b32.xlu0 %v69_v11, %s155_s19 }
  0x1f   :  { %76 = vrot.lane.b32.xlu1 %v75_v12, %s156_s20 }
  0x22   :  { %82 = vrot.lane.b32.xlu0 %v81_v14, %s157_s21 }
  0x23   :  { %88 = vrot.lane.b32.xlu1 %v87_v15, %s158_s22 }
  0x26   :  { %94 = vrot.lane.b32.xlu0 %v93_v16, %s159_s23 }
  0x27   :  { %100 = vrot.lane.b32.xlu1 %v99_v17, %s160_s24 }
  0x2a   :  { %106 = vrot.lane.b32.xlu0 %v105_v18, %s161_s25 }
  0x7c   :  { %v11_v19 = vpop.permute.xlu0 %10  }
  0x7d   :  { %v23_v20 = vpop.permute.xlu1 %22   ;;  %111 = vst.msk [vmem:[%s248_s1 + $0x1] sm:$0x1] %vm7_vm0, %v11_v19  }
  0x7e   :  { %113 = vst.msk [vmem:[%s248_s1 + $0x3] sm:$0x1] %vm7_vm0, %v23_v20  }
  0x80   :  { %v17_v21 = vpop.permute.xlu0 %16  }
  0x81   :  { %v29_v22 = vpop.permute.xlu1 %28   ;;  %112 = vst.msk [vmem:[%s248_s1 + $0x2] sm:$0x1] %vm7_vm0, %v17_v21  }
  0x82   :  { %114 = vst.msk [vmem:[%s248_s1 + $0x4] sm:$0x1] %vm7_vm0, %v29_v22  }
  0x84   :  { %v35_v23 = vpop.permute.xlu0 %34  }
  0x85   :  { %v41_v24 = vpop.permute.xlu1 %40   ;;  %115 = vst.msk [vmem:[%s248_s1 + $0x5] sm:$0x1] %vm7_vm0, %v35_v23  }
  0x86   :  { %116 = vst.msk [vmem:[%s248_s1 + $0x6] sm:$0x1] %vm7_vm0, %v41_v24  }
  0x88   :  { %v47_v25 = vpop.permute.xlu0 %46  }
  0x89   :  { %v53_v26 = vpop.permute.xlu1 %52   ;;  %117 = vst.msk [vmem:[%s248_s1 + $0x7] sm:$0x1] %vm7_vm0, %v47_v25  }
  0x8a   :  { %118 = vst.msk [vmem:[%s248_s1 + $0x8] sm:$0x1] %vm7_vm0, %v53_v26  }
  0x8c   :  { %v59_v27 = vpop.permute.xlu0 %58  }
  0x8d   :  { %v65_v28 = vpop.permute.xlu1 %64   ;;  %119 = vst.msk [vmem:[%s248_s1 + $0x9] sm:$0x1] %vm7_vm0, %v59_v27  }
  0x8e   :  { %120 = vst.msk [vmem:[%s248_s1 + $0xa] sm:$0x1] %vm7_vm0, %v65_v28  }
  0x90   :  { %v71_v29 = vpop.permute.xlu0 %70  }
  0x91   :  { %v77_v30 = vpop.permute.xlu1 %76   ;;  %121 = vst.msk [vmem:[%s248_s1 + $0xb] sm:$0x1] %vm7_vm0, %v71_v29  }
  0x92   :  { %122 = vst.msk [vmem:[%s248_s1 + $0xc] sm:$0x1] %vm7_vm0, %v77_v30  }
  0x94   :  { %v83_v31 = vpop.permute.xlu0 %82  }
  0x95   :  { %v89_v32 = vpop.permute.xlu1 %88   ;;  %123 = vst.msk [vmem:[%s248_s1 + $0xd] sm:$0x1] %vm7_vm0, %v83_v31  }
  0x96   :  { %124 = vst.msk [vmem:[%s248_s1 + $0xe] sm:$0x1] %vm7_vm0, %v89_v32  }
  0x98   :  { %v95_v33 = vpop.permute.xlu0 %94  }
  0x99   :  { %v101_v34 = vpop.permute.xlu1 %100   ;;  %125 = vst.msk [vmem:[%s248_s1 + $0xf] sm:$0x1] %vm7_vm0, %v95_v33  }
  0x9a   :  { %126 = vst.msk [vmem:[%s248_s1 + $0x10] sm:$0x1] %vm7_vm0, %v101_v34  }
  0x9c   :  { %v107_v35 = vpop.permute.xlu0 %106  }
  0x9d   :  { %127 = vst.msk [vmem:[%s248_s1 + $0x11] sm:$0x1] %vm7_vm0, %v107_v35  }

// kernel: tile.30
= control target key start
LH: loop header
LB: loop body
LE: loop exit
PB: predicated region body
PF: predicated region fallthrough
CT: control target
= control target key end

     0   :  { %s28_s0 = inlined_call_operand.vmem [shape: f32[4], index: 0, kind: input, shape index: {}]   ;;  %s29_s1 = inlined_call_operand.vmem [shape: f32[16,4], index: 1, kind: output, shape index: {}]  }
   0x1   :  { %v4_v0 = vld [vmem:[%s28_s0] ss:$0 sm:$0xff] }
   0x2   :  { %5 = vst [vmem:[%s29_s1] sm:$0xff] %v4_v0  ;;  %8 = vst [vmem:[%s29_s1 + $0x8] sm:$0xff] %v4_v0 }

// kernel: tile.31
= control target key start
LH: loop header
LB: loop body
LE: loop exit
PB: predicated region body
PF: predicated region fallthrough
CT: control target
= control target key end

     0   :  { %s131_s10 = smov 60   ;;  %s132_s11 = smov 52   ;;  %vm3_vm0 = vcmask 31744   ;;  %vm9_vm1 = vcmask 523744   ;;  %vm15_vm2 = vcmask 490944   ;;  %vm21_vm3 = vcmask 458144   ;;  %s207_s0 = inlined_call_operand.vmem [shape: f32[16,4], index: 0, kind: input, shape index: {}]   ;;  %s208_s1 = inlined_call_operand.vmem [shape: f32[64], index: 1, kind: output, shape index: {}]  }
   0x1   :  { %v101_v0 = vld [vmem:[%s207_s0 + $0xf] sm:$0x1]   ;;  %v103_v1 = vld [vmem:[%s207_s0 + $0xd] sm:$0x1]   ;;  %v102_v2 = vld [vmem:[%s207_s0 + $0xe] sm:$0x1]  }
   0x2   :  { %7 = vrot.lane.b32.xlu0 %v101_v0, %s131_s10  ;;  %19 = vrot.lane.b32.xlu1 %v103_v1, %s132_s11  ;;  %v104_v3 = vld [vmem:[%s207_s0 + $0xc] sm:$0x1]   ;;  %s133_s16 = smov 56   ;;  %s134_s17 = smov 48   ;;  %v105_v4 = vld [vmem:[%s207_s0 + $0xb] sm:$0x1]  }
   0x3   :  { %v106_v5 = vld [vmem:[%s207_s0 + $0xa] sm:$0x1]   ;;  %v2_v6 = vld [vmem:[%s207_s0] sm:$0x1]   ;;  %s135_s24 = smov 44   ;;  %s136_s25 = smov 40  }
   0x4   :  { %4 = vst.msk [vmem:[#allocation0] sm:$0x1] %vm3_vm0, %v2_v6   ;;  %v107_v7 = vld [vmem:[%s207_s0 + $0x9] sm:$0x1]   ;;  %v108_v8 = vld [vmem:[%s207_s0 + $0x8] sm:$0x1]  }
   0x5   :  { %s137_s30 = smov 36   ;;  %s138_s2 = smov 32   ;;  %v109_v9 = vld [vmem:[%s207_s0 + $0x7] sm:$0x1]   ;;  %v110_v10 = vld [vmem:[%s207_s0 + $0x6] sm:$0x1]  }
   0x6   :  { %13 = vrot.lane.b32.xlu0 %v102_v2, %s133_s16  ;;  %25 = vrot.lane.b32.xlu1 %v104_v3, %s134_s17  ;;  %s139_s7 = smov 28   ;;  %s140_s8 = smov 24   ;;  %v111_v11 = vld [vmem:[%s207_s0 + $0x5] sm:$0x1]   ;;  %v112_v12 = vld [vmem:[%s207_s0 + $0x4] sm:$0x1]  }
   0x7   :  { %s141_s13 = smov 20   ;;  %s142_s14 = smov 16   ;;  %v113_v13 = vld [vmem:[%s207_s0 + $0x3] sm:$0x1]   ;;  %v114_v14 = vld [vmem:[%s207_s0 + $0x2] sm:$0x1]  }
   0x8   :  { %s143_s19 = smov 12   ;;  %s144_s20 = smov 8   ;;  %v115_v15 = vld [vmem:[%s207_s0 + $0x1] sm:$0x1]   ;;  %vm27_vm4 = vcmask 425344   ;;  %vm33_vm5 = vcmask 392544  }
   0x9   :  { %s145_s0 = smov 4   ;;  %vm39_vm6 = vcmask 359744   ;;  %vm45_vm7 = vcmask 326944   ;;  %vm51_vm8 = vcmask 294144   ;;  %vm57_vm9 = vcmask 261344  }
   0xa   :  { %31 = vrot.lane.b32.xlu0 %v105_v4, %s135_s24  ;;  %37 = vrot.lane.b32.xlu1 %v106_v5, %s136_s25  ;;  %vm63_vm10 = vcmask 228544   ;;  %vm69_vm11 = vcmask 195744   ;;  %vm75_vm12 = vcmask 162944   ;;  %vm81_vm13 = vcmask 130144  }
   0xb   :  { %vm87_vm14 = vcmask 97344   ;;  %vm93_vm15 = vcmask 64544  }
   0xe   :  { %43 = vrot.lane.b32.xlu0 %v107_v7, %s137_s30  ;;  %49 = vrot.lane.b32.xlu1 %v108_v8, %s138_s2 }
  0x12   :  { %55 = vrot.lane.b32.xlu0 %v109_v9, %s139_s7  ;;  %61 = vrot.lane.b32.xlu1 %v110_v10, %s140_s8 }
  0x16   :  { %67 = vrot.lane.b32.xlu0 %v111_v11, %s141_s13  ;;  %73 = vrot.lane.b32.xlu1 %v112_v12, %s142_s14 }
  0x1a   :  { %79 = vrot.lane.b32.xlu0 %v113_v13, %s143_s19  ;;  %85 = vrot.lane.b32.xlu1 %v114_v14, %s144_s20 }
  0x1e   :  { %91 = vrot.lane.b32.xlu0 %v115_v15, %s145_s0 }
  0x74   :  { %v8_v16 = vpop.permute.xlu0 %7   ;;  %v20_v17 = vpop.permute.xlu1 %19  }
  0x75   :  { %10 = vst.msk [vmem:[#allocation0] sm:$0x1] %vm9_vm1, %v8_v16  }
  0x78   :  { %v14_v18 = vpop.permute.xlu0 %13   ;;  %v26_v19 = vpop.permute.xlu1 %25  }
  0x79   :  { %16 = vst.msk [vmem:[#allocation0] sm:$0x1] %vm15_vm2, %v14_v18  }
  0x7a   :  { %22 = vst.msk [vmem:[#allocation0] sm:$0x1] %vm21_vm3, %v20_v17  }
  0x7b   :  { %28 = vst.msk [vmem:[#allocation0] sm:$0x1] %vm27_vm4, %v26_v19  }
  0x7c   :  { %v32_v20 = vpop.permute.xlu0 %31   ;;  %v38_v21 = vpop.permute.xlu1 %37  }
  0x7d   :  { %34 = vst.msk [vmem:[#allocation0] sm:$0x1] %vm33_vm5, %v32_v20  }
  0x7e   :  { %40 = vst.msk [vmem:[#allocation0] sm:$0x1] %vm39_vm6, %v38_v21  }
  0x80   :  { %v44_v22 = vpop.permute.xlu0 %43   ;;  %v50_v23 = vpop.permute.xlu1 %49  }
  0x81   :  { %46 = vst.msk [vmem:[#allocation0] sm:$0x1] %vm45_vm7, %v44_v22  }
  0x82   :  { %52 = vst.msk [vmem:[#allocation0] sm:$0x1] %vm51_vm8, %v50_v23  }
  0x84   :  { %v56_v24 = vpop.permute.xlu0 %55   ;;  %v62_v25 = vpop.permute.xlu1 %61  }
  0x85   :  { %58 = vst.msk [vmem:[#allocation0] sm:$0x1] %vm57_vm9, %v56_v24  }
  0x86   :  { %64 = vst.msk [vmem:[#allocation0] sm:$0x1] %vm63_vm10, %v62_v25  }
  0x88   :  { %v68_v26 = vpop.permute.xlu0 %67   ;;  %v74_v27 = vpop.permute.xlu1 %73  }
  0x89   :  { %70 = vst.msk [vmem:[#allocation0] sm:$0x1] %vm69_vm11, %v68_v26  }
  0x8a   :  { %76 = vst.msk [vmem:[#allocation0] sm:$0x1] %vm75_vm12, %v74_v27  }
  0x8c   :  { %v80_v28 = vpop.permute.xlu0 %79   ;;  %v86_v29 = vpop.permute.xlu1 %85  }
  0x8d   :  { %82 = vst.msk [vmem:[#allocation0] sm:$0x1] %vm81_vm13, %v80_v28  }
  0x8e   :  { %88 = vst.msk [vmem:[#allocation0] sm:$0x1] %vm87_vm14, %v86_v29  }
  0x90   :  { %v92_v30 = vpop.permute.xlu0 %91  }
  0x91   :  { %94 = vst.msk [vmem:[#allocation0] sm:$0x1] %vm93_vm15, %v92_v30  }
  0x98   :  { %v98_v31 = vld [vmem:[#allocation0] sm:$0x1] }
  0x99   :  { %100 = vst [vmem:[%s208_s1] sm:$0x1] %v98_v31 }

// kernel: conv_blocks_forward.2
= control target key start
LH: loop header
LB: loop body
LE: loop exit
PB: predicated region body
PF: predicated region fallthrough
CT: control target
= control target key end

     0   :  { %v64_v0 = vmov 0.0   ;;  %vm25_vm0 = vcmask 1043456   ;;  %s113_s1 = inlined_call_operand.vmem [shape: f32[1,128], index: 1, kind: output, shape index: {0}]   ;;  %s114_s2 = inlined_call_operand.vmem [shape: f32[1,128], index: 2, kind: output, shape index: {1}]   ;;  %s115_s0 = inlined_call_operand.vmem [shape: f32[36,128], index: 0, kind: input, shape index: {}]  }
   0x1   :  { %14 = vst [vmem:[%s113_s1] sm:$0x1] %v64_v0  ;;  %15 = vst [vmem:[%s114_s2] sm:$0x1] %v64_v0  ;;  %v16_v1 = vld [vmem:[%s115_s0] sm:$0xff]  ;;  %v17_v2 = vld [vmem:[%s115_s0 + $0x8] sm:$0xff] }
   0x2   :  { %v18_v3 = vld [vmem:[%s115_s0 + $0x10] sm:$0xff]  ;;  %v19_v4 = vld [vmem:[%s115_s0 + $0x18] sm:$0xff]  ;;  %v20_v5 = vld [vmem:[%s115_s0 + $0x20] sm:$0xf]  ;;  %v22_v6 = vadd.f32 %v17_v2, %v16_v1  ;;  %v37_v7 = vmul.f32 %v16_v1, %v16_v1  ;;  %v38_v8 = vmul.f32 %v17_v2, %v17_v2 }
   0x3   :  { %v39_v9 = vmul.f32 %v18_v3, %v18_v3  ;;  %v41_v10 = vmul.f32 %v20_v5, %v20_v5  ;;  %v40_v12 = vmul.f32 %v19_v4, %v19_v4  ;;  %v26_v14 = vsel %vm25_vm0, %v20_v5, 0.0 }
   0x4   :  { %v23_v11 = vadd.f32 %v22_v6, %v18_v3  ;;  %v42_v13 = vadd.f32 %v38_v8, %v37_v7 }
   0x5   :  { %v45_v17 = vsel %vm25_vm0, %v41_v10, 0.0 }
   0x6   :  { %v24_v15 = vadd.f32 %v23_v11, %v19_v4  ;;  %v43_v16 = vadd.f32 %v42_v13, %v39_v9 }
   0x8   :  { %v27_v18 = vadd.f32 %v26_v14, %v24_v15  ;;  %v44_v19 = vadd.f32 %v43_v16, %v40_v12  ;;  %v21_v30 = vld [vmem:[%s113_s1] sm:$0x1] }
   0x9   :  { %v36_v33 = vld [vmem:[%s114_s2] sm:$0x1] }
   0xa   :  { %v28_v20 = vrot.slane %v27_v18, 4  ;;  %v46_v21 = vadd.f32 %v45_v17, %v44_v19 }
   0xc   :  { %v29_v22 = vadd.f32 %v28_v20, %v27_v18  ;;  %v47_v23 = vrot.slane %v46_v21, 4 }
   0xe   :  { %v30_v24 = vrot.slane %v29_v22, 2  ;;  %v48_v25 = vadd.f32 %v47_v23, %v46_v21 }
  0x10   :  { %v31_v26 = vadd.f32 %v30_v24, %v29_v22  ;;  %v49_v27 = vrot.slane %v48_v25, 2 }
  0x12   :  { %v32_v28 = vrot.slane %v31_v26, 1  ;;  %v50_v29 = vadd.f32 %v49_v27, %v48_v25 }
  0x14   :  { %v33_v31 = vadd.f32 %v32_v28, %v31_v26  ;;  %v51_v32 = vrot.slane %v50_v29, 1 }
  0x16   :  { %v34_v34 = vadd.f32 %v33_v31, %v21_v30  ;;  %v52_v35 = vadd.f32 %v51_v32, %v50_v29 }
  0x18   :  { %35 = vst [vmem:[%s113_s1] sm:$0x1] %v34_v34  ;;  %v53_v36 = vadd.f32 %v52_v35, %v36_v33 }
  0x1a   :  { %54 = vst [vmem:[%s114_s2] sm:$0x1] %v53_v36 }

// kernel: conv_blocks_forward.3
= control target key start
LH: loop header
LB: loop body
LE: loop exit
PB: predicated region body
PF: predicated region fallthrough
CT: control target
= control target key end

     0   :  { %vm57_vm0 = vcmask 1046528   ;;  %vm72_vm1 = vcmask 1045504   ;;  %s670_s3 = inlined_call_operand.vmem [shape: bf16[384,128], index: 3, kind: input, shape index: {}]   ;;  %s671_s0 = inlined_call_operand.vmem [shape: f32[2,18,128], index: 0, kind: input, shape index: {}]   ;;  %s672_s1 = inlined_call_operand.vmem [shape: f32[18,128], index: 1, kind: input, shape index: {}]   ;;  %s673_s2 = inlined_call_operand.vmem [shape: f32[18,128], index: 2, kind: input, shape index: {}]   ;;  %s674_s4 = inlined_call_operand.vmem [shape: f32[1,128], index: 4, kind: input, shape index: {}]   ;;  %s675_s5 = inlined_call_operand.vmem [shape: f32[2,16,128], index: 5, kind: output, shape index: {}]  }
   0x1   :  { %v485_v0 = vld [vmem:[%s670_s3 + $0x40] sm:$0xff]   ;;  %v488_v3 = vld [vmem:[%s670_s3 + $0x48] sm:$0xff]   ;;  %v491_v6 = vld [vmem:[%s670_s3 + $0x50] sm:$0xff]  }
   0x2   :  { %v486_v1 = vld [vmem:[%s670_s3] sm:$0xff]   ;;  %427 = vmatprep.subr.bf16.mxu0 %v485_v0  ;;  %v489_v4 = vld [vmem:[%s670_s3 + $0x8] sm:$0xff]   ;;  %v492_v7 = vld [vmem:[%s670_s3 + $0x10] sm:$0xff]  }
   0x3   :  { %v487_v2 = vld [vmem:[%s670_s3 + $0x80] sm:$0xff]   ;;  %428 = vmatpush3.bf16.msra.mxu0 %v486_v1  ;;  %v490_v5 = vld [vmem:[%s670_s3 + $0x88] sm:$0xff]   ;;  %v493_v8 = vld [vmem:[%s670_s3 + $0x90] sm:$0xff]  }
   0x4   :  { %465 = vmatprep.subr.bf16.mxu1 %v487_v2  ;;  %429 = vmatprep.subr.bf16.mxu0 %v488_v3  ;;  %v494_v9 = vld [vmem:[%s670_s3 + $0x58] sm:$0xff]   ;;  %v497_v12 = vld [vmem:[%s670_s3 + $0x60] sm:$0xff]   ;;  %v500_v15 = vld [vmem:[%s670_s3 + $0x68] sm:$0xff]  }
   0x5   :  { %466 = vmatpush3.bf16.msra.mxu1 %v487_v2  ;;  %v495_v10 = vld [vmem:[%s670_s3 + $0x18] sm:$0xff]   ;;  %v499_v13 = vld [vmem:[%s670_s3 + $0xa0] sm:$0xff]   ;;  %v502_v16 = vld [vmem:[%s670_s3 + $0xa8] sm:$0xff]  }
   0x6   :  { %467 = vmatprep.subr.bf16.mxu1 %v490_v5  ;;  %v496_v11 = vld [vmem:[%s670_s3 + $0x98] sm:$0xff]   ;;  %v498_v14 = vld [vmem:[%s670_s3 + $0x20] sm:$0xff]   ;;  %v501_v17 = vld [vmem:[%s670_s3 + $0x28] sm:$0xff]  }
   0x7   :  { %430 = vmatpush3.bf16.msra.mxu0 %v489_v4  ;;  %v503_v18 = vld [vmem:[%s670_s3 + $0x70] sm:$0xff]   ;;  %v506_v21 = vld [vmem:[%s670_s3 + $0x78] sm:$0xff]   ;;  %v21_v23 = vld [vmem:[%s671_s0] sm:$0xff] }
   0x8   :  { %431 = vmatprep.subr.bf16.mxu0 %v491_v6  ;;  %v504_v19 = vld [vmem:[%s670_s3 + $0x30] sm:$0xff]   ;;  %v508_v22 = vld [vmem:[%s670_s3 + $0xb8] sm:$0xff]   ;;  %v22_v24 = vld [vmem:[%s671_s0 + $0x8] sm:$0xff] }
   0x9   :  { %468 = vmatpush3.bf16.msra.mxu1 %v490_v5  ;;  %v505_v20 = vld [vmem:[%s670_s3 + $0xb0] sm:$0xff]   ;;  %v507_v26 = vld [vmem:[%s670_s3 + $0x38] sm:$0xff]   ;;  %v25_v28 = vld [vmem:[%s671_s0 + $0x20] sm:$0xff] }
   0xa   :  { %469 = vmatprep.subr.bf16.mxu1 %v493_v8  ;;  %v23_v25 = vld [vmem:[%s671_s0 + $0x10] sm:$0x3]  ;;  %v24_v27 = vld [vmem:[%s671_s0 + $0x18] sm:$0xff]  ;;  %v26_v29 = vld [vmem:[%s671_s0 + $0x28] sm:$0x3] }
   0xb   :  { %432 = vmatpush3.bf16.msra.mxu0 %v492_v7  ;;  %v27_v30 = vld [vmem:[%s672_s1] sm:$0xff]  ;;  %v28_v31 = vld [vmem:[%s672_s1 + $0x8] sm:$0xff]  ;;  %v29_v32 = vld [vmem:[%s672_s1 + $0x10] sm:$0x3] }
   0xc   :  { %433 = vmatprep.subr.bf16.mxu0 %v494_v9  ;;  %v30_v33 = vmul.f32 %v27_v30, %v21_v23  ;;  %v31_v34 = vmul.f32 %v28_v31, %v22_v24  ;;  %v32_v35 = vmul.f32 %v29_v32, %v23_v25  ;;  %v33_v36 = vmul.f32 %v27_v30, %v24_v27  ;;  %v36_v37 = vld [vmem:[%s673_s2] sm:$0xff]  ;;  %v37_v38 = vld [vmem:[%s673_s2 + $0x8] sm:$0xff]  ;;  %v38_v39 = vld [vmem:[%s673_s2 + $0x10] sm:$0x3] }
   0xd   :  { %470 = vmatpush3.bf16.msra.mxu1 %v493_v8  ;;  %v34_v40 = vmul.f32 %v28_v31, %v25_v28  ;;  %v35_v41 = vmul.f32 %v29_v32, %v26_v29  ;;  %v426_v23 = vld [vmem:[%s674_s4] ss:$0 sm:$0xff] }
   0xe   :  { %471 = vmatprep.subr.bf16.mxu1 %v496_v11  ;;  %v39_v42 = vadd.f32 %v36_v37, %v30_v33  ;;  %v40_v43 = vadd.f32 %v37_v38, %v31_v34  ;;  %v41_v44 = vadd.f32 %v38_v39, %v32_v35  ;;  %v42_v45 = vadd.f32 %v36_v37, %v33_v36 }
   0xf   :  { %434 = vmatpush3.bf16.msra.mxu0 %v495_v10  ;;  %v43_v46 = vadd.f32 %v37_v38, %v34_v40  ;;  %v44_v47 = vadd.f32 %v38_v39, %v35_v41 }
  0x10   :  { %435 = vmatprep.subr.bf16.mxu0 %v497_v12  ;;  %v45_v48 = vmax.f32 %v39_v42, 0.0  ;;  %v46_v49 = vmax.f32 %v40_v43, 0.0  ;;  %v47_v50 = vmax.f32 %v41_v44, 0.0  ;;  %v48_v51 = vmax.f32 %v42_v45, 0.0 }
  0x11   :  { %472 = vmatpush3.bf16.msra.mxu1 %v496_v11  ;;  %v49_v52 = vmax.f32 %v43_v46, 0.0  ;;  %v50_v53 = vmax.f32 %v44_v47, 0.0 }
  0x12   :  { %473 = vmatprep.subr.bf16.mxu1 %v499_v13  ;;  %v58_v54 = vrot.slane %v45_v48, 1  ;;  %v59_v55 = vrot.slane %v46_v49, 1  ;;  %v61_v56 = vrot.slane %v47_v50, 1  ;;  %v87_v57 = vpack.c.bf16 %v46_v49, %v45_v48 }
  0x13   :  { %436 = vmatpush3.bf16.msra.mxu0 %v498_v14  ;;  %v73_v58 = vrot.slane %v45_v48, 2  ;;  %v74_v59 = vrot.slane %v46_v49, 2  ;;  %v76_v60 = vrot.slane %v47_v50, 2  ;;  %v78_v61 = vrot.slane %v48_v51, 2 }
  0x14   :  { %437 = vmatprep.subr.bf16.mxu0 %v500_v15  ;;  %v60_v62 = vsel %vm57_vm0, %v58_v54, %v59_v55  ;;  %v62_v63 = vsel %vm57_vm0, %v59_v55, %v61_v56  ;;  %v79_v0 = vrot.slane %v49_v52, 2  ;;  %v81_v1 = vrot.slane %v50_v53, 2 }
  0x15   :  { %474 = vmatpush3.bf16.msra.mxu1 %v499_v13  ;;  %v88_v2 = vpack.c.bf16 %v62_v63, %v60_v62  ;;  %v75_v3 = vsel %vm72_vm1, %v73_v58, %v74_v59  ;;  %v77_v4 = vsel %vm72_vm1, %v74_v59, %v76_v60  ;;  %v63_v5 = vrot.slane %v48_v51, 1 }
  0x16   :  { %475 = vmatprep.subr.bf16.mxu1 %v502_v16  ;;  %v89_v6 = vpack.c.bf16 %v77_v4, %v75_v3  ;;  %v80_v7 = vsel %vm72_vm1, %v78_v61, %v79_v0  ;;  %v82_v8 = vsel %vm72_vm1, %v79_v0, %v81_v1  ;;  %v64_v9 = vrot.slane %v49_v52, 1 }
  0x17   :  { %438 = vmatpush3.bf16.msra.mxu0 %v501_v17  ;;  %317 = vmatprep.mubr.bf16.mxu0 %v88_v2  ;;  %v92_v10 = vpack.c.bf16 %v82_v8, %v80_v7  ;;  %v66_v11 = vrot.slane %v50_v53, 1  ;;  %v90_v15 = vpack.c.bf16 %v49_v52, %v48_v51 }
  0x18   :  { %439 = vmatprep.subr.bf16.mxu0 %v503_v18  ;;  %481 = vmatprep.mubr.bf16.mxu1 %v89_v6  ;;  %v65_v12 = vsel %vm57_vm0, %v63_v5, %v64_v9 }
  0x19   :  { %476 = vmatpush3.bf16.msra.mxu1 %v502_v16  ;;  %v67_v13 = vsel %vm57_vm0, %v64_v9, %v66_v11 }
  0x1a   :  { %477 = vmatprep.subr.bf16.mxu1 %v505_v20  ;;  %v91_v14 = vpack.c.bf16 %v67_v13, %v65_v12 }
  0x1b   :  { %440 = vmatpush3.bf16.msra.mxu0 %v504_v19 }
  0x1c   :  { %441 = vmatprep.subr.bf16.mxu0 %v506_v21 }
  0x1d   :  { %478 = vmatpush3.bf16.msra.mxu1 %v505_v20 }
  0x1e   :  { %479 = vmatprep.subr.bf16.mxu1 %v508_v22 }
  0x1f   :  { %442 = vmatpush3.bf16.msra.mxu0 %v507_v26 }
  0x21   :  { %480 = vmatpush3.bf16.msra.mxu1 %v508_v22 }
  0x22   :  { %318 = vmatmul.mubr.bf16.vlgmr.msra.gmra.mrb[0].mxu0 %v87_v57 }
  0x23   :  { %325 = vmatprep.mubr.bf16.mxu0 %v91_v14 }
  0x24   :  { %482 = vmatmul.mubr.bf16.vlgmr.msra.gmra.mrb[0].mxu1 %v92_v10 }
  0x2a   :  { %326 = vmatmul.mubr.bf16.gmra.mrb[4].mxu0 %v90_v15 }
  0xf5   :  { %v443_v16 = vpop.f32.mrb[0].mxu0 }
  0xf6   :  { %v444_v17 = vpop.f32.mrb[1].mxu0 }
  0xf7   :  { %v483_v18 = vpop.f32.mrb[0].mxu1  ;;  %v445_v19 = vadd.f32 %v444_v17, %v443_v16  ;;  %v446_v20 = vpop.f32.mrb[2].mxu0 }
  0xf8   :  { %v368_v21 = vpop.f32.mrb[1].mxu1  ;;  %v447_v22 = vpop.f32.mrb[3].mxu0 }
  0xf9   :  { %v484_v24 = vpop.f32.mrb[2].mxu1  ;;  %v448_v25 = vadd.f32 %v447_v22, %v446_v20  ;;  %v369_v26 = vadd.f32 %v445_v19, %v368_v21 }
  0xfa   :  { %v371_v27 = vpop.f32.mrb[3].mxu1 }
  0xfb   :  { %v390_v28 = vadd.f32 %v426_v23, %v369_v26  ;;  %v372_v29 = vadd.f32 %v448_v25, %v371_v27 }
  0xfd   :  { %394 = vst [vmem:[%s675_s5] sm:$0xff] %v390_v28  ;;  %v391_v30 = vadd.f32 %v426_v23, %v372_v29  ;;  %v449_v31 = vpop.f32.mrb[4].mxu0 }
  0xfe   :  { %v450_v32 = vpop.f32.mrb[5].mxu0 }
  0xff   :  { %395 = vst [vmem:[%s675_s5 + $0x8] sm:$0xff] %v391_v30  ;;  %v451_v33 = vadd.f32 %v450_v32, %v449_v31  ;;  %v452_v34 = vpop.f32.mrb[6].mxu0 }
 0x100   :  { %v453_v35 = vpop.f32.mrb[7].mxu0 }
 0x101   :  { %v377_v36 = vadd.f32 %v483_v18, %v451_v33  ;;  %v454_v37 = vadd.f32 %v453_v35, %v452_v34 }
 0x103   :  { %v392_v38 = vadd.f32 %v426_v23, %v377_v36  ;;  %v380_v39 = vadd.f32 %v484_v24, %v454_v37 }
 0x105   :  { %396 = vst [vmem:[%s675_s5 + $0x10] sm:$0xff] %v392_v38  ;;  %v393_v40 = vadd.f32 %v426_v23, %v380_v39 }
 0x107   :  { %397 = vst [vmem:[%s675_s5 + $0x18] sm:$0xff] %v393_v40 }

</bundles_post_ra>
